<compile_context>
chip_gen: v7x
topology: tpu7x:2x2x1
jax: 0.10.0
libtpu: 0.0.40
codegen_flags: <defaults>
</compile_context>

<pallas_src>
from functools import partial

import jax
import jax.numpy as jnp
import numpy as np
from jax.experimental import pallas as pl
from jax.experimental.pallas import tpu as pltpu

_LANE = 128
# Candidate lane widths for the flat slab, widest first.
_WIDTHS = (8192, 4096, 2048, 1024, 512, 256, 128)
# ~2 MiB per block: 2 operands x 2 pipeline buffers ~= 8 MiB VMEM, safe on
# v5e/v6e (32 MiB scoped default) and v7x (64 MiB physical VMEM).
_TARGET_BLOCK_BYTES = 2 * 1024 * 1024


def _copy_kernel(x_ref, o_ref):
    # Identity copy of one (tile_rows, width) tile through VMEM.
    o_ref[...] = x_ref[...]


def _resolve_shape(total, shape):
    """Resolve a single -1 (torch.view semantics) against the element count."""
    shape = list(shape)
    if shape.count(-1) > 1:
        raise ValueError("only one -1 allowed in view shape")
    if -1 in shape:
        known = 1
        for s in shape:
            if s != -1:
                known *= int(s)
        if known == 0 or total % known != 0:
            raise ValueError(f"cannot view {total} elements as {tuple(shape)}")
        shape[shape.index(-1)] = total // known
    if int(np.prod(shape, dtype=np.int64)) != total:
        raise ValueError(f"cannot view {total} elements as {tuple(shape)}")
    return tuple(int(s) for s in shape)


def _slab_geometry(total, itemsize):
    """Pick (padded_total, lane_width, rows, tile_rows) for the flat copy."""
    padded = pl.cdiv(total, _LANE) * _LANE
    width = _LANE
    for w in _WIDTHS:
        if padded % w == 0:
            width = w
            break
    rows = padded // width
    row_bytes = width * itemsize

    # Rows per block, targeting ~_TARGET_BLOCK_BYTES, multiple of 8 (sublane).
    tile_rows = max(1, _TARGET_BLOCK_BYTES // row_bytes)
    tile_rows = max(8, (tile_rows // 8) * 8)
    if rows >= 16:
        # Keep at least 2 grid steps so the single "parallel" axis can shard
        # the stream across v7x's two TensorCores (neutral on v5e/v6e).
        half = max(8, ((rows + 1) // 2) // 8 * 8)
        tile_rows = min(tile_rows, half)
    if tile_rows >= rows:
        tile_rows = rows  # single full-extent block (always a legal shape)
    return padded, width, rows, tile_rows


@partial(jax.jit, static_argnums=(1,))
def _view_impl(x, out_shape):
    total = x.size
    itemsize = x.dtype.itemsize
    padded, width, rows, tile_rows = _slab_geometry(total, itemsize)

    flat = x.reshape(-1)                       # bitcast inside jit
    needs_pad = padded != total
    if needs_pad:
        # TODO(synk): pad + trailing slice add one extra pass; only hit when
        # x.size is not a multiple of 128.
        flat = jnp.pad(flat, (0, padded - total))
    slab = flat.reshape(rows, width)

    grid = (pl.cdiv(rows, tile_rows),)
    out = pl.pallas_call(
        _copy_kernel,
        out_shape=jax.ShapeDtypeStruct((rows, width), x.dtype),
        grid_spec=pltpu.PrefetchScalarGridSpec(
            num_scalar_prefetch=0,
            grid=grid,
            in_specs=[pl.BlockSpec((tile_rows, width), lambda i: (i, 0))],
            out_specs=pl.BlockSpec((tile_rows, width), lambda i: (i, 0)),
        ),
        compiler_params=pltpu.CompilerParams(
            dimension_semantics=("parallel",),
        ),
        cost_estimate=pl.CostEstimate(
            flops=0,
            transcendentals=0,
            bytes_accessed=2 * rows * width * itemsize,
        ),
        # Alias only when the operand is a fresh intermediate (pad output);
        # aliasing the (un-donated) jit parameter would force a defensive copy.
        input_output_aliases={0: 0} if needs_pad else {},
    )(slab)

    if needs_pad:
        out = out.reshape(-1)[:total]
    # Reinterpret the contiguous buffer — the actual `view` (bitcast in jit).
    return out.reshape(out_shape)


def view(x, shape):
    """Pallas-backed equivalent of torch.Tensor.view(*shape) for contiguous x."""
    out_shape = _resolve_shape(x.size, shape)
    return _view_impl(x, out_shape)


class View:
    """Mirror of the PyTorch module: holds the target shape."""

    def __init__(self, shape):
        self.shape = tuple(shape)

    def __call__(self, x):
        return view(x, self.shape)


if __name__ == "__main__":
    key = jax.random.PRNGKey(0)
    # NCHW input, viewed to flatten channel/spatial dims per sample.
    x = jax.random.normal(key, (2, 4, 16, 16), dtype=jnp.float32)

    mod = View((2, -1))  # -> (2, 1024)
    y = mod(x)
    jax.block_until_ready(y)

    # Reference check against plain reshape (== torch .view on contiguous x).
    ref = np.asarray(x).reshape(2, -1)
    assert y.shape == (2, 1024), y.shape
    assert y.dtype == x.dtype, y.dtype
    np.testing.assert_array_equal(np.asarray(y), ref)

    print("KERNEL_OK")
</pallas_src>

<mosaic_0001>
module attributes {stable_mosaic.version = 11 : i64} {
  func.func @_copy_kernel(%arg0: i32, %arg1: memref<1x2048xf32, #tpu.memory_space<vmem>>, %arg2: memref<1x2048xf32, #tpu.memory_space<vmem>>) attributes {dimension_semantics = [#tpu.dimension_semantics<parallel>], iteration_bounds = array<i64: 1>, scalar_prefetch = 0 : i64, scratch_operands = 0 : i64, tpu.core_type = #tpu.core_type<tc>, window_params = [{transform_indices = @transform_0, window_bounds = array<i64: 1, 2048>}, {transform_indices = @transform_1, window_bounds = array<i64: 1, 2048>}]} {
    %c0 = arith.constant 0 : index
    %c0_0 = arith.constant 0 : index
    %0 = vector.load %arg1[%c0, %c0_0] : memref<1x2048xf32, #tpu.memory_space<vmem>>, vector<1x2048xf32>
    %c0_1 = arith.constant 0 : index
    %c0_2 = arith.constant 0 : index
    %1 = vector.load %arg2[%c0_1, %c0_2] : memref<1x2048xf32, #tpu.memory_space<vmem>>, vector<1x2048xf32>
    tpu.vector_store %arg2[%c0_1, %c0_2], %0 {strides = array<i32>} : memref<1x2048xf32, #tpu.memory_space<vmem>>, vector<1x2048xf32>,
    return
  }
  func.func @transform_0(%arg0: i32) -> (i32, i32) {
    %c0_i32 = arith.constant 0 : i32
    %c0_i32_0 = arith.constant 0 : i32
    return %arg0, %c0_i32 : i32, i32
  }
  func.func @transform_1(%arg0: i32) -> (i32, i32) {
    %c0_i32 = arith.constant 0 : i32
    %c0_i32_0 = arith.constant 0 : i32
    return %arg0, %c0_i32 : i32, i32
  }
}

</mosaic_0001>

<bundles_post_ra>
// kernel: _view_impl.1
= control target key start
LH: loop header
LB: loop body
LE: loop exit
PB: predicated region body
PF: predicated region fallthrough
CT: control target
= control target key end

     0   :  { %s38_s0 = inlined_call_operand.vmem [shape: f32[1,2048], index: 0, kind: input, shape index: {}]   ;;  %s39_s1 = inlined_call_operand.vmem [shape: f32[1,2048], index: 1, kind: output, shape index: {}]  }
   0x1   :  { %v8_v0 = vld [vmem:[%s38_s0] sm:$0xff]  ;;  %v9_v1 = vld [vmem:[%s38_s0 + $0x8] sm:$0xff] }
   0x2   :  { %10 = vst [vmem:[%s39_s1] sm:$0xff] %v8_v0  ;;  %11 = vst [vmem:[%s39_s1 + $0x8] sm:$0xff] %v9_v1 }

</bundles_post_ra>
